<compile_context>
chip_gen: v5e
topology: v5e:2x2
jax: 0.10.0
libtpu: 0.0.40
codegen_flags: <defaults>
</compile_context>

<pallas_src>
import functools

import jax
import jax.numpy as jnp
from jax.experimental import pallas as pl
from jax.experimental.pallas import tpu as pltpu

LANE = 128


def _round_up(v, m):
    return ((v + m - 1) // m) * m


def _pad_to(a, rows, cols):
    pr, pc = rows - a.shape[0], cols - a.shape[1]
    if pr == 0 and pc == 0:
        return a
    return jnp.pad(a, ((0, pr), (0, pc)))


def build_mean_adjacency(edge_index, num_nodes):
    """Row-normalized adjacency A[i, j] = 1/deg_in(i) for each edge j -> i."""
    src = edge_index[0]
    dst = edge_index[1]
    a = jnp.zeros((num_nodes, num_nodes), jnp.float32)
    a = a.at[dst, src].add(1.0)
    deg = jnp.sum(a, axis=1, keepdims=True)
    return a / jnp.maximum(deg, 1.0)


def _fused_graphsage_kernel(a_ref, x_ref, w1_ref, b1_ref, w2_ref, b2_ref,
                            o_ref, tl_ref, tr_ref, *, tile_m, out_p):
    i = pl.program_id(0)

    @pl.when(i == 0)
    def _():
        # ---- Layer 1 (all nodes, computed once per kernel invocation) ----
        x = x_ref[...]
        # mean aggregation via row-normalized dense adjacency
        agg = jnp.dot(a_ref[...], x, preferred_element_type=jnp.float32)
        # conv1: one MXU pass over concat([agg, x]) @ [W_l1 ; W_r1] + b1
        feat = jnp.concatenate([agg.astype(jnp.bfloat16), x], axis=-1)
        z1 = jnp.dot(feat, w1_ref[...], preferred_element_type=jnp.float32)
        h = jnp.maximum(z1 + b1_ref[...], 0.0).astype(jnp.bfloat16)
        # TODO(synk): F.dropout(h, training=True) would use pltpu.prng_random_bits;
        # identity in eval mode (module forward uses self.training).
        # conv2 feature matmuls, reassociated: t = h @ [W_l2 | W_r2]
        t = jnp.dot(h, w2_ref[...], preferred_element_type=jnp.float32)
        tl_ref[...] = t[:, :out_p].astype(jnp.bfloat16)        # h @ W_l2
        tr_ref[...] = t[:, out_p:] + b2_ref[...]                # h @ W_r2 + b2

    # ---- Layer 2 aggregation for this dst-row tile ----
    # out[tile] = A[tile] @ (h @ W_l2) + (h @ W_r2 + b2)[tile]
    row0 = pl.multiple_of(i * tile_m, tile_m)
    a_rows = a_ref[pl.ds(row0, tile_m), :]
    agg2 = jnp.dot(a_rows, tl_ref[...], preferred_element_type=jnp.float32)
    o_ref[...] = agg2 + tr_ref[pl.ds(row0, tile_m), :]


def graphsage_net(x, edge_index, params):
    """Forward pass of GraphSAGENet (inference mode: dropout is identity)."""
    n, fin = x.shape
    h_dim = params["w_l1"].shape[1]
    out_dim = params["w_l2"].shape[1]

    fin_p = _round_up(fin, LANE)
    h_p = _round_up(h_dim, LANE)
    out_p = _round_up(out_dim, LANE)

    # Pad node count so the dst-row tiling and (8,128) sublane rule hold.
    n_p = _round_up(n, 8) if n <= 256 else _round_up(n, 256)
    tile_m = min(n_p, 256)
    nt = n_p // tile_m

    # bf16 for the O(N^2) operand and activations; f32 accumulation in-kernel.
    adj = build_mean_adjacency(edge_index, n)
    adj = _pad_to(adj, n_p, n_p).astype(jnp.bfloat16)           # [N_p, N_p]
    x_p = _pad_to(x, n_p, fin_p).astype(jnp.bfloat16)           # [N_p, Fin_p]

    # concat weights so each layer's feature transform is a single MXU call
    w1 = jnp.concatenate([_pad_to(params["w_l1"], fin_p, h_p),
                          _pad_to(params["w_r1"], fin_p, h_p)],
                         axis=0).astype(jnp.bfloat16)           # [2*Fin_p, H_p]
    b1 = _pad_to(params["b1"], 1, h_p)                          # [1, H_p] f32
    w2 = jnp.concatenate([_pad_to(params["w_l2"], h_p, out_p),
                          _pad_to(params["w_r2"], h_p, out_p)],
                         axis=1).astype(jnp.bfloat16)           # [H_p, 2*Out_p]
    b2 = _pad_to(params["b2"], 1, out_p)                        # [1, Out_p] f32

    kernel = functools.partial(_fused_graphsage_kernel,
                               tile_m=tile_m, out_p=out_p)

    flops = (2 * n_p * n_p * fin_p             # A @ X
             + 2 * n_p * (2 * fin_p) * h_p     # [agg|x] @ W1
             + 2 * n_p * h_p * (2 * out_p)     # h @ W2
             + 2 * n_p * n_p * out_p)          # A @ (h @ W_l2)
    bytes_accessed = (adj.size * 2 + x_p.size * 2 + w1.size * 2
                      + w2.size * 2 + b1.size * 4 + b2.size * 4
                      + n_p * out_p * 4)

    out_padded = pl.pallas_call(
        kernel,
        out_shape=jax.ShapeDtypeStruct((n_p, out_p), jnp.float32),
        grid_spec=pltpu.PrefetchScalarGridSpec(
            num_scalar_prefetch=0,
            grid=(nt,),
            in_specs=[
                pl.BlockSpec((n_p, n_p), lambda i: (0, 0)),        # A (resident)
                pl.BlockSpec((n_p, fin_p), lambda i: (0, 0)),      # X (resident)
                pl.BlockSpec((2 * fin_p, h_p), lambda i: (0, 0)),  # W1 concat
                pl.BlockSpec((1, h_p), lambda i: (0, 0)),          # b1
                pl.BlockSpec((h_p, 2 * out_p), lambda i: (0, 0)),  # W2 concat
                pl.BlockSpec((1, out_p), lambda i: (0, 0)),        # b2
            ],
            out_specs=pl.BlockSpec((tile_m, out_p), lambda i: (i, 0)),
            scratch_shapes=[
                pltpu.VMEM((n_p, out_p), jnp.bfloat16),  # t_l = h @ W_l2
                pltpu.VMEM((n_p, out_p), jnp.float32),   # t_r = h @ W_r2 + b2
            ],
        ),
        compiler_params=pltpu.CompilerParams(
            # The dst-row axis carries the shared layer-1 scratch, so it must be
            # sequential ("arbitrary"); per-core splitting for v7x would need a
            # separate parallel axis with per-core layer-1 recompute.
            dimension_semantics=("arbitrary",),
            vmem_limit_bytes=32 * 1024 * 1024,
        ),
        cost_estimate=pl.CostEstimate(
            flops=flops, transcendentals=0, bytes_accessed=bytes_accessed),
    )(adj, x_p, w1, b1, w2, b2)

    return out_padded[:n, :out_dim]


def init_params(key, in_channels, hidden_channels, out_channels):
    k = jax.random.split(key, 6)
    scale1 = 1.0 / jnp.sqrt(in_channels)
    scale2 = 1.0 / jnp.sqrt(hidden_channels)
    return {
        # weights stored already transposed: [F_in, F_out]
        "w_l1": jax.random.uniform(k[0], (in_channels, hidden_channels),
                                   jnp.float32, -scale1, scale1),
        "w_r1": jax.random.uniform(k[1], (in_channels, hidden_channels),
                                   jnp.float32, -scale1, scale1),
        "b1": jax.random.uniform(k[2], (1, hidden_channels),
                                 jnp.float32, -scale1, scale1),
        "w_l2": jax.random.uniform(k[3], (hidden_channels, out_channels),
                                   jnp.float32, -scale2, scale2),
        "w_r2": jax.random.uniform(k[4], (hidden_channels, out_channels),
                                   jnp.float32, -scale2, scale2),
        "b2": jax.random.uniform(k[5], (1, out_channels),
                                 jnp.float32, -scale2, scale2),
    }


if __name__ == "__main__":
    key = jax.random.PRNGKey(0)
    k_x, k_e, k_p = jax.random.split(key, 3)

    num_nodes = 64
    in_channels = 16
    hidden_channels = 32
    out_channels = 8
    num_edges = 256

    x = jax.random.normal(k_x, (num_nodes, in_channels), jnp.float32)
    edge_index = jax.random.randint(k_e, (2, num_edges), 0, num_nodes,
                                    dtype=jnp.int32)
    params = init_params(k_p, in_channels, hidden_channels, out_channels)

    out = graphsage_net(x, edge_index, params)
    out = jax.block_until_ready(out)
    assert out.shape == (num_nodes, out_channels)

    # Plain-JAX f32 reference (same math, no Pallas). bf16 operands in the
    # kernel -> relaxed tolerance.
    adj_f32 = build_mean_adjacency(edge_index, num_nodes)
    h_ref = jnp.maximum(
        adj_f32 @ x @ params["w_l1"] + x @ params["w_r1"] + params["b1"], 0.0)
    out_ref = (adj_f32 @ h_ref @ params["w_l2"] + h_ref @ params["w_r2"]
               + params["b2"])
    assert jnp.allclose(out, out_ref, atol=5e-2, rtol=5e-2)

    print("KERNEL_OK")
</pallas_src>

<mosaic_0001>
module attributes {stable_mosaic.version = 11 : i64} {
  func.func @_fused_graphsage_kernel(%arg0: i32, %arg1: memref<64x64xbf16, #tpu.memory_space<vmem>>, %arg2: memref<64x128xbf16, #tpu.memory_space<vmem>>, %arg3: memref<256x128xbf16, #tpu.memory_space<vmem>>, %arg4: memref<1x128xf32, #tpu.memory_space<vmem>>, %arg5: memref<128x256xbf16, #tpu.memory_space<vmem>>, %arg6: memref<1x128xf32, #tpu.memory_space<vmem>>, %arg7: memref<64x128xf32, #tpu.memory_space<vmem>>, %arg8: memref<64x128xbf16, #tpu.memory_space<vmem>>, %arg9: memref<64x128xf32, #tpu.memory_space<vmem>>) attributes {dimension_semantics = [#tpu.dimension_semantics<arbitrary>], iteration_bounds = array<i64: 1>, scalar_prefetch = 0 : i64, scratch_operands = 2 : i64, tpu.core_type = #tpu.core_type<tc>, window_params = [{pipeline_mode = #tpu.pipeline_mode<synchronous>, transform_indices = @transform_0, window_bounds = array<i64: 64, 64>}, {pipeline_mode = #tpu.pipeline_mode<synchronous>, transform_indices = @transform_1, window_bounds = array<i64: 64, 128>}, {pipeline_mode = #tpu.pipeline_mode<synchronous>, transform_indices = @transform_2, window_bounds = array<i64: 256, 128>}, {pipeline_mode = #tpu.pipeline_mode<synchronous>, transform_indices = @transform_3, window_bounds = array<i64: 1, 128>}, {pipeline_mode = #tpu.pipeline_mode<synchronous>, transform_indices = @transform_4, window_bounds = array<i64: 128, 256>}, {pipeline_mode = #tpu.pipeline_mode<synchronous>, transform_indices = @transform_5, window_bounds = array<i64: 1, 128>}, {transform_indices = @transform_6, window_bounds = array<i64: 64, 128>}]} {
    %c0_i32 = arith.constant 0 : i32
    %0 = arith.cmpi eq, %arg0, %c0_i32 : i32
    %1 = arith.extui %0 : i1 to i32
    %c0_i32_0 = arith.constant 0 : i32
    %2 = arith.cmpi ne, %1, %c0_i32_0 : i32
    scf.if %2 {
      %c0_6 = arith.constant 0 : index
      %c0_7 = arith.constant 0 : index
      %13 = vector.load %arg2[%c0_6, %c0_7] : memref<64x128xbf16, #tpu.memory_space<vmem>>, vector<64x128xbf16>
      %c0_8 = arith.constant 0 : index
      %c0_9 = arith.constant 0 : index
      %14 = vector.load %arg1[%c0_8, %c0_9] : memref<64x64xbf16, #tpu.memory_space<vmem>>, vector<64x64xbf16>
      %cst_10 = arith.constant dense<0.000000e+00> : vector<64x128xf32>
      %15 = tpu.matmul %14, %13, %cst_10 {dimension_numbers = #tpu.dot_dimension_numbers<[1], [0], [0], [1], [0, 0, 1, 1], [], []>} : vector<64x64xbf16>, vector<64x128xbf16>, vector<64x128xf32> -> vector<64x128xf32>
      %16 = arith.truncf %15 : vector<64x128xf32> to vector<64x128xbf16>
      %17 = tpu.concatenate %16, %13 in 1 : vector<64x128xbf16>, vector<64x128xbf16> -> vector<64x256xbf16>
      %c0_11 = arith.constant 0 : index
      %c0_12 = arith.constant 0 : index
      %18 = vector.load %arg3[%c0_11, %c0_12] : memref<256x128xbf16, #tpu.memory_space<vmem>>, vector<256x128xbf16>
      %cst_13 = arith.constant dense<0.000000e+00> : vector<64x128xf32>
      %19 = tpu.matmul %17, %18, %cst_13 {dimension_numbers = #tpu.dot_dimension_numbers<[1], [0], [0], [1], [0, 0, 1, 1], [], []>} : vector<64x256xbf16>, vector<256x128xbf16>, vector<64x128xf32> -> vector<64x128xf32>
      %c0_14 = arith.constant 0 : index
      %c0_15 = arith.constant 0 : index
      %20 = vector.load %arg4[%c0_14, %c0_15] : memref<1x128xf32, #tpu.memory_space<vmem>>, vector<1x128xf32>
      %21 = vector.broadcast %20 : vector<1x128xf32> to vector<64x128xf32>
      %22 = arith.addf %19, %21 : vector<64x128xf32>
      %cst_16 = arith.constant 0.000000e+00 : f32
      %23 = vector.broadcast %cst_16 : f32 to vector<64x128xf32>
      %24 = arith.maximumf %22, %23 : vector<64x128xf32>
      %25 = arith.truncf %24 : vector<64x128xf32> to vector<64x128xbf16>
      %c0_17 = arith.constant 0 : index
      %c0_18 = arith.constant 0 : index
      %26 = vector.load %arg5[%c0_17, %c0_18] : memref<128x256xbf16, #tpu.memory_space<vmem>>, vector<128x256xbf16>
      %cst_19 = arith.constant dense<0.000000e+00> : vector<64x256xf32>
      %27 = tpu.matmul %25, %26, %cst_19 {dimension_numbers = #tpu.dot_dimension_numbers<[1], [0], [0], [1], [0, 0, 1, 1], [], []>} : vector<64x128xbf16>, vector<128x256xbf16>, vector<64x256xf32> -> vector<64x256xf32>
      %28 = vector.extract_strided_slice %27 {offsets = [0, 0], sizes = [64, 128], strides = [1, 1]} : vector<64x256xf32> to vector<64x128xf32>
      %29 = arith.truncf %28 : vector<64x128xf32> to vector<64x128xbf16>
      %c0_20 = arith.constant 0 : index
      %c0_21 = arith.constant 0 : index
      %30 = vector.load %arg8[%c0_20, %c0_21] : memref<64x128xbf16, #tpu.memory_space<vmem>>, vector<64x128xbf16>
      tpu.vector_store %arg8[%c0_20, %c0_21], %29 {strides = array<i32>} : memref<64x128xbf16, #tpu.memory_space<vmem>>, vector<64x128xbf16>,
      %31 = vector.extract_strided_slice %27 {offsets = [0, 128], sizes = [64, 128], strides = [1, 1]} : vector<64x256xf32> to vector<64x128xf32>
      %c0_22 = arith.constant 0 : index
      %c0_23 = arith.constant 0 : index
      %32 = vector.load %arg6[%c0_22, %c0_23] : memref<1x128xf32, #tpu.memory_space<vmem>>, vector<1x128xf32>
      %33 = vector.broadcast %32 : vector<1x128xf32> to vector<64x128xf32>
      %34 = arith.addf %31, %33 : vector<64x128xf32>
      %c0_24 = arith.constant 0 : index
      %c0_25 = arith.constant 0 : index
      %35 = vector.load %arg9[%c0_24, %c0_25] : memref<64x128xf32, #tpu.memory_space<vmem>>, vector<64x128xf32>
      tpu.vector_store %arg9[%c0_24, %c0_25], %34 {strides = array<i32>} : memref<64x128xf32, #tpu.memory_space<vmem>>, vector<64x128xf32>,
    } else {
    }
    %c64_i32 = arith.constant 64 : i32
    %3 = arith.muli %arg0, %c64_i32 : i32
    %4 = tpu.assume_multiple %3, 64 : i32
    %5 = arith.index_cast %4 : i32 to index
    %c0 = arith.constant 0 : index
    %6 = vector.load %arg1[%5, %c0] : memref<64x64xbf16, #tpu.memory_space<vmem>>, vector<64x64xbf16>
    %c0_1 = arith.constant 0 : index
    %c0_2 = arith.constant 0 : index
    %7 = vector.load %arg8[%c0_1, %c0_2] : memref<64x128xbf16, #tpu.memory_space<vmem>>, vector<64x128xbf16>
    %cst = arith.constant dense<0.000000e+00> : vector<64x128xf32>
    %8 = tpu.matmul %6, %7, %cst {dimension_numbers = #tpu.dot_dimension_numbers<[1], [0], [0], [1], [0, 0, 1, 1], [], []>} : vector<64x64xbf16>, vector<64x128xbf16>, vector<64x128xf32> -> vector<64x128xf32>
    %9 = arith.index_cast %4 : i32 to index
    %c0_3 = arith.constant 0 : index
    %10 = vector.load %arg9[%9, %c0_3] : memref<64x128xf32, #tpu.memory_space<vmem>>, vector<64x128xf32>
    %11 = arith.addf %8, %10 : vector<64x128xf32>
    %c0_4 = arith.constant 0 : index
    %c0_5 = arith.constant 0 : index
    %12 = vector.load %arg7[%c0_4, %c0_5] : memref<64x128xf32, #tpu.memory_space<vmem>>, vector<64x128xf32>
    tpu.vector_store %arg7[%c0_4, %c0_5], %11 {strides = array<i32>} : memref<64x128xf32, #tpu.memory_space<vmem>>, vector<64x128xf32>,
    return
  }
  func.func @transform_0(%arg0: i32) -> (i32, i32) {
    %c0_i32 = arith.constant 0 : i32
    %c0_i32_0 = arith.constant 0 : i32
    %c0_i32_1 = arith.constant 0 : i32
    return %c0_i32, %c0_i32_0 : i32, i32
  }
  func.func @transform_1(%arg0: i32) -> (i32, i32) {
    %c0_i32 = arith.constant 0 : i32
    %c0_i32_0 = arith.constant 0 : i32
    %c0_i32_1 = arith.constant 0 : i32
    return %c0_i32, %c0_i32_0 : i32, i32
  }
  func.func @transform_2(%arg0: i32) -> (i32, i32) {
    %c0_i32 = arith.constant 0 : i32
    %c0_i32_0 = arith.constant 0 : i32
    %c0_i32_1 = arith.constant 0 : i32
    return %c0_i32, %c0_i32_0 : i32, i32
  }
  func.func @transform_3(%arg0: i32) -> (i32, i32) {
    %c0_i32 = arith.constant 0 : i32
    %c0_i32_0 = arith.constant 0 : i32
    %c0_i32_1 = arith.constant 0 : i32
    return %c0_i32, %c0_i32_0 : i32, i32
  }
  func.func @transform_4(%arg0: i32) -> (i32, i32) {
    %c0_i32 = arith.constant 0 : i32
    %c0_i32_0 = arith.constant 0 : i32
    %c0_i32_1 = arith.constant 0 : i32
    return %c0_i32, %c0_i32_0 : i32, i32
  }
  func.func @transform_5(%arg0: i32) -> (i32, i32) {
    %c0_i32 = arith.constant 0 : i32
    %c0_i32_0 = arith.constant 0 : i32
    %c0_i32_1 = arith.constant 0 : i32
    return %c0_i32, %c0_i32_0 : i32, i32
  }
  func.func @transform_6(%arg0: i32) -> (i32, i32) {
    %c0_i32 = arith.constant 0 : i32
    %c0_i32_0 = arith.constant 0 : i32
    return %arg0, %c0_i32 : i32, i32
  }
}

</mosaic_0001>

<bundles_post_ra>
// kernel: tpu_custom_call.1
= control target key start
LH: loop header
LB: loop body
LE: loop exit
PB: predicated region body
PF: predicated region fallthrough
CT: control target
= control target key end

     0   :  { %11 = vsyncpa [#allocation5], 0  ;;  %s1286_s0 = inlined_call_operand.hbm [shape: bf16[64,64], index: 0, kind: input, shape index: {}]   ;;  %s1287_s1 = inlined_call_operand.hbm [shape: bf16[64,128], index: 1, kind: input, shape index: {}]   ;;  %s1288_s2 = inlined_call_operand.hbm [shape: bf16[256,128], index: 2, kind: input, shape index: {}]   ;;  %s1289_s3 = inlined_call_operand.vmem [shape: f32[1,128], index: 3, kind: input, shape index: {}]   ;;  %s1290_s4 = inlined_call_operand.hbm [shape: bf16[128,256], index: 4, kind: input, shape index: {}]   ;;  %s1291_s5 = inlined_call_operand.vmem [shape: f32[1,128], index: 5, kind: input, shape index: {}]   ;;  %s1292_s6 = inlined_call_operand.hbm [shape: f32[64,128], index: 6, kind: output, shape index: {}]  }
   0x1   :  { %12 = vsyncpa [#allocation8], 0 }
   0x2   :  { %13 = vsyncpa [#allocation11], 0 }
   0x3   :  { %14 = vsyncpa [#allocation6], 0  ;;  %s32_s23 = sshll.u32 %s1287_s1, 4  ;;  %s1187_s24 = smov [#allocation7]   ;;  %s33_s23 = int_to_ptr.hbm [resolvable:$true] %s32_s23 }
   0x4   :  { %s34_s25 = sshll.u32 %s1187_s24, 4  ;;  %s19_s28 = sshll.u32 %s1286_s0, 4  ;;  %s35_s25 = int_to_ptr.vmem [resolvable:$true] %s34_s25  ;;  %s20_s28 = int_to_ptr.hbm [resolvable:$true] %s19_s28 }
   0x5   :  { %s1188_s29 = smov 64   ;;  %s1189_s30 = smov 4  }
   0x6   :  { %40 = dma.hbm_to_vmem [thread:$0]  %s33_s23, 512, %s35_s25, [#allocation8], %s1188_s29, %s1188_s29, %s1189_s30  }
   0x7   :  { %s1190_s7 = smov [#allocation4]   ;;  %s45_s11 = sshll.u32 %s1288_s2, 4  ;;  %s46_s11 = int_to_ptr.hbm [resolvable:$true] %s45_s11 }
   0x8   :  { %s21_s8 = sshll.u32 %s1190_s7, 4  ;;  %s60_s13 = sshll.u32 %s1290_s4, 4  ;;  %s22_s8 = int_to_ptr.vmem [resolvable:$true] %s21_s8  ;;  %s61_s13 = int_to_ptr.hbm [resolvable:$true] %s60_s13 }
   0x9   :  { %27 = dma.hbm_to_vmem [thread:$0]  %s20_s28, 512, %s22_s8, [#allocation5], %s1188_s29, %s1188_s29, %s1189_s30  }
   0xa   :  { %s1191_s14 = smov [#allocation9]   ;;  %s1192_s0 = smov [#allocation10]  }
   0xb   :  { %s47_s15 = sshll.u32 %s1191_s14, 4  ;;  %s62_s16 = sshll.u32 %s1192_s0, 4  ;;  %s48_s15 = int_to_ptr.vmem [resolvable:$true] %s47_s15  ;;  %s63_s16 = int_to_ptr.vmem [resolvable:$true] %s62_s16 }
   0xc   :  { %53 = dma.hbm_to_vmem [thread:$0]  %s46_s11, 2048, %s48_s15, [#allocation8], %s1188_s29, %s1188_s29, %s1189_s30  }
   0xd   :  { %s1193_s17 = smov 128   ;;  %s1194_s18 = smov 8  }
   0xe   :  { %68 = dma.hbm_to_vmem [thread:$0]  %s61_s13, 2048, %s63_s16, [#allocation11], %s1193_s17, %s1193_s17, %s1194_s18  }
   0xf   :  { %1179 = dma.done.wait [#allocation5], 512  }
  0x10   :  { %1180 = vsyncadd [#allocation5], 4294966784 }
  0x11   :  { %1181 = dma.done.wait [#allocation8], 2560  }
  0x12   :  { %1182 = vsyncadd [#allocation8], 4294964736 }
  0x13   :  { %1183 = dma.done.wait [#allocation11], 2048  }
  0x14   :  { %1184 = vsyncadd [#allocation11], 4294965248  ;;  %v1246_v0 = vld [vmem:[#allocation7 + $0x18] sm:$0xff]  ;;  %v1249_v1 = vld [vmem:[#allocation7 + $0x10] sm:$0xff]  ;;  %vm152_vm0 = vcmask 523264   ;;  %s748_s23 = sshll.u32 %s1292_s6, 4  ;;  %s749_s23 = int_to_ptr.hbm [resolvable:$true] %s748_s23 }
  0x15   :  { %1036 = vmatpush.bf16.msra.mxu3 %v1246_v0  ;;  %169 = vmatpush.bf16.msra.mxu0 %v1246_v0  ;;  %v980_v2 = vld [vmem:[#allocation9 + $0x38] sm:$0xff]  ;;  %v979_v3 = vld [vmem:[#allocation9 + $0x30] sm:$0xff]  ;;  %v1253_v4 = vld [vmem:[#allocation7 + $0x8] sm:$0xff] }
  0x16   :  { %1040 = vmatpush.bf16.msra.mxu2 %v980_v2  ;;  %358 = vmatpush.bf16.msra.mxu1 %v980_v2  ;;  %v978_v5 = vld [vmem:[#allocation9 + $0x28] sm:$0xff]  ;;  %v1257_v6 = vld [vmem:[#allocation7] sm:$0xff]  ;;  %v971_v8 = vld [vmem:[#allocation4 + $0x10] sm:$0xff] }
  0x17   :  { %v977_v7 = vld [vmem:[#allocation9 + $0x20] sm:$0xff]  ;;  %v972_v10 = vld [vmem:[#allocation4 + $0x18] sm:$0xff]  ;;  %v970_v11 = vld [vmem:[#allocation4 + $0x8] sm:$0xff] }
  0x18   :  { %v969_v9 = vld [vmem:[#allocation4] sm:$0xff]  ;;  %v976_v12 = vld [vmem:[#allocation9 + $0x18] sm:$0xff]  ;;  %v975_v13 = vld [vmem:[#allocation9 + $0x10] sm:$0xff] }
  0x19   :  { %1037 = vmatpush.bf16.msra.mxu3 %v1249_v1  ;;  %170 = vmatpush.bf16.msra.mxu0 %v1249_v1  ;;  %v974_v14 = vld [vmem:[#allocation9 + $0x8] sm:$0xff]  ;;  %v973_v15 = vld [vmem:[#allocation9] sm:$0xff]  ;;  %v988_v16 = vld [vmem:[#allocation9 + $0x78] sm:$0xff] }
  0x1a   :  { %1041 = vmatpush.bf16.msra.mxu2 %v979_v3  ;;  %359 = vmatpush.bf16.msra.mxu1 %v979_v3  ;;  %v987_v17 = vld [vmem:[#allocation9 + $0x70] sm:$0xff]  ;;  %v986_v18 = vld [vmem:[#allocation9 + $0x68] sm:$0xff]  ;;  %v985_v20 = vld [vmem:[#allocation9 + $0x60] sm:$0xff] }
  0x1b   :  { %v984_v21 = vld [vmem:[#allocation9 + $0x58] sm:$0xff]  ;;  %v983_v24 = vld [vmem:[#allocation9 + $0x50] sm:$0xff]  ;;  %v982_v28 = vld [vmem:[#allocation9 + $0x48] sm:$0xff] }
  0x1c   :  { %v981_v33 = vld [vmem:[#allocation9 + $0x40] sm:$0xff]  ;;  %v923_v52 = vld [vmem:[#allocation10 + $0x70] sm:$0xf]  ;;  %v1004_v53 = vld [vmem:[#allocation10 + $0x74] sm:$0xf0] }
  0x1d   :  { %1038 = vmatpush.bf16.msra.mxu3 %v1253_v4  ;;  %171 = vmatpush.bf16.msra.mxu0 %v1253_v4  ;;  %v1003_v54 = vld [vmem:[#allocation10 + $0x74] sm:$0xf]  ;;  %v924_v55 = vor.u32 %v1004_v53, %v923_v52  ;;  %v925_v56 = vld [vmem:[#allocation10 + $0x78] sm:$0xf0]  ;;  %v915_v58 = vld [vmem:[#allocation10 + $0x60] sm:$0xf] }
  0x1e   :  { %1042 = vmatpush.bf16.msra.mxu2 %v978_v5  ;;  %360 = vmatpush.bf16.msra.mxu1 %v978_v5  ;;  %v928_v57 = vor.u32 %v1003_v54, %v925_v56  ;;  %v1002_v59 = vld [vmem:[#allocation10 + $0x64] sm:$0xf0]  ;;  %v1001_v60 = vld [vmem:[#allocation10 + $0x64] sm:$0xf]  ;;  %v917_v62 = vld [vmem:[#allocation10 + $0x68] sm:$0xf0] }
  0x1f   :  { %v916_v61 = vor.u32 %v1002_v59, %v915_v58  ;;  %v920_v63 = vor.u32 %v1001_v60, %v917_v62  ;;  %v907_v2 = vld [vmem:[#allocation10 + $0x50] sm:$0xf]  ;;  %v999_v3 = vld [vmem:[#allocation10 + $0x54] sm:$0xf] }
  0x21   :  { %1039 = vmatpush.bf16.msra.mxu3 %v1257_v6  ;;  %172 = vmatpush.bf16.msra.mxu0 %v1257_v6 }
  0x22   :  { %1043 = vmatpush.bf16.msra.mxu2 %v977_v7  ;;  %361 = vmatpush.bf16.msra.mxu1 %v977_v7  ;;  %v998_v7 = vld [vmem:[#allocation10 + $0x44] sm:$0xf0] }
  0x24   :  { %799 = vmatmul.msk.bf16.vlgmr.msra.gmra.mxu3 %vm152_vm0, %v971_v8  ;;  %797 = vmatmul.msk.bf16.vlgmr.msra.gmra.mxu0 %vm152_vm0, %v969_v9  ;;  %v997_v8 = vld [vmem:[#allocation10 + $0x44] sm:$0xf] }
  0x25   :  { %524 = vmatpush.bf16.msrb.mxu3 %v924_v55  ;;  %553 = vmatpush.bf16.msrb.mxu0 %v928_v57 }
  0x26   :  { %1044 = vmatpush.bf16.msra.mxu2 %v976_v12  ;;  %362 = vmatpush.bf16.msra.mxu1 %v976_v12  ;;  %v891_v12 = vld [vmem:[#allocation10 + $0x30] sm:$0xf] }
  0x29   :  { %525 = vmatpush.bf16.msrb.mxu3 %v916_v61  ;;  %554 = vmatpush.bf16.msrb.mxu0 %v920_v63 }
  0x2a   :  { %1045 = vmatpush.bf16.msra.mxu2 %v975_v13  ;;  %363 = vmatpush.bf16.msra.mxu1 %v975_v13  ;;  %v996_v13 = vld [vmem:[#allocation10 + $0x34] sm:$0xf0] }
  0x2e   :  { %1046 = vmatpush.bf16.msra.mxu2 %v974_v14  ;;  %364 = vmatpush.bf16.msra.mxu1 %v974_v14  ;;  %v995_v14 = vld [vmem:[#allocation10 + $0x34] sm:$0xf] }
  0x32   :  { %1047 = vmatpush.bf16.msra.mxu2 %v973_v15  ;;  %365 = vmatpush.bf16.msra.mxu1 %v973_v15  ;;  %v892_v15 = vor.u32 %v996_v13, %v891_v12 }
  0x34   :  { %800 = vmatmul.msk.bf16.gmra.mxu3 %vm152_vm0, %v972_v10  ;;  %798 = vmatmul.msk.bf16.gmra.mxu0 %vm152_vm0, %v970_v11  ;;  %v901_v10 = vld [vmem:[#allocation10 + $0x48] sm:$0xf0] }
  0x35   :  { %v904_v11 = vor.u32 %v997_v8, %v901_v10 }
  0x36   :  { %387 = vmatpush.bf16.msrb.mxu2 %v988_v16  ;;  %v893_v16 = vld [vmem:[#allocation10 + $0x38] sm:$0xf0] }
  0x3a   :  { %388 = vmatpush.bf16.msrb.mxu2 %v987_v17  ;;  %v896_v17 = vor.u32 %v995_v14, %v893_v16 }
  0x3e   :  { %389 = vmatpush.bf16.msrb.mxu2 %v986_v18 }
  0x42   :  { %390 = vmatpush.bf16.msrb.mxu2 %v985_v20  ;;  %v994_v20 = vld [vmem:[#allocation10 + $0x24] sm:$0xf0] }
  0x46   :  { %391 = vmatpush.bf16.msrb.mxu2 %v984_v21  ;;  %v993_v21 = vld [vmem:[#allocation10 + $0x24] sm:$0xf] }
  0x4a   :  { %392 = vmatpush.bf16.msrb.mxu2 %v983_v24 }
  0x4e   :  { %393 = vmatpush.bf16.msrb.mxu2 %v982_v28 }
  0x52   :  { %394 = vmatpush.bf16.msrb.mxu2 %v981_v33  ;;  %v990_v33 = vld [vmem:[#allocation10 + $0x4] sm:$0xf0] }
  0xa1   :  { %v174_v19 = vpop.f32.mrf.mxu0 }
  0xa2   :  { %v194_v22 = vpack.c.bf16 %v174_v19, %v174_v19  ;;  %v883_v19 = vld [vmem:[#allocation10 + $0x20] sm:$0xf] }
  0xa4   :  { %v210_v26 = vunpack.c.l.b16 %v194_v22  ;;  %v884_v22 = vor.u32 %v994_v20, %v883_v19 }
  0xa7   :  { %v184_v23 = vpop.f32.mrf.mxu3 }
  0xa8   :  { %v198_v30 = vpack.c.bf16 %v184_v23, %v184_v23  ;;  %v885_v23 = vld [vmem:[#allocation10 + $0x28] sm:$0xf0] }
  0xa9   :  { %v176_v25 = vpop.f32.mrf.mxu0  ;;  %v888_v24 = vor.u32 %v993_v21, %v885_v23 }
  0xaa   :  { %v195_v27 = vpack.c.bf16 %v176_v25, %v176_v25  ;;  %v214_v36 = vunpack.c.l.b16 %v198_v30  ;;  %v875_v25 = vld [vmem:[#allocation10 + $0x10] sm:$0xf] }
  0xac   :  { %v211_v29 = vunpack.c.l.b16 %v195_v27  ;;  %v991_v27 = vld [vmem:[#allocation10 + $0x14] sm:$0xf] }
  0xae   :  { %v218_v31 = vpack.c.b16 %v211_v29, %v210_v26  ;;  %v992_v26 = vld [vmem:[#allocation10 + $0x14] sm:$0xf0]  ;;  %v877_v29 = vld [vmem:[#allocation10 + $0x18] sm:$0xf0] }
  0xaf   :  { %v186_v32 = vpop.f32.mrf.mxu3  ;;  %v876_v28 = vor.u32 %v992_v26, %v875_v25  ;;  %v880_v30 = vor.u32 %v991_v27, %v877_v29 }
  0xb0   :  { %v199_v34 = vpack.c.bf16 %v186_v32, %v186_v32  ;;  %366 = vmatmul.bf16.vlgmr.msra.gmra.mxu1 %v218_v31  ;;  %v867_v32 = vld [vmem:[#allocation10] sm:$0xf] }
  0xb1   :  { %v179_v35 = vpop.f32.mrf.mxu0 }
  0xb2   :  { %v215_v37 = vunpack.c.l.b16 %v199_v34  ;;  %v196_v39 = vpack.c.bf16 %v179_v35, %v179_v35  ;;  %v989_v34 = vld [vmem:[#allocation10 + $0x4] sm:$0xf]  ;;  %v868_v35 = vor.u32 %v990_v33, %v867_v32 }
  0xb3   :  { %v1005_v33 = vld [vmem:[#allocation4] sm:$0xff] }
  0xb4   :  { %v220_v38 = vpack.c.b16 %v215_v37, %v214_v36  ;;  %v212_v42 = vunpack.c.l.b16 %v196_v39  ;;  %v869_v36 = vld [vmem:[#allocation10 + $0x8] sm:$0xf0] }
  0xb5   :  { %v872_v37 = vor.u32 %v989_v34, %v869_v36  ;;  %v1006_v34 = vld [vmem:[#allocation4 + $0x8] sm:$0xff]  ;;  %v1008_v36 = vld [vmem:[#allocation4 + $0x18] sm:$0xff] }
  0xb6   :  { %376 = vmatmul.bf16.vlgmr.msra.gmra.mxu2 %v220_v38 }
  0xb7   :  { %v189_v40 = vpop.f32.mrf.mxu3 }
  0xb8   :  { %v200_v45 = vpack.c.bf16 %v189_v40, %v189_v40 }
  0xb9   :  { %v181_v41 = vpop.f32.mrf.mxu0 }
  0xba   :  { %v197_v43 = vpack.c.bf16 %v181_v41, %v181_v41  ;;  %v216_v49 = vunpack.c.l.b16 %v200_v45 }
  0xbc   :  { %v213_v44 = vunpack.c.l.b16 %v197_v43  ;;  %v1057_v43 = vld [vmem:[%s1289_s3] ss:$0 sm:$0xff] }
  0xbe   :  { %v219_v46 = vpack.c.b16 %v213_v44, %v212_v42 }
  0xbf   :  { %v191_v47 = vpop.f32.mrf.mxu3 }
  0xc0   :  { %v201_v48 = vpack.c.bf16 %v191_v47, %v191_v47  ;;  %371 = vmatmul.bf16.gmra.mxu1 %v219_v46 }
  0xc2   :  { %v217_v50 = vunpack.c.l.b16 %v201_v48 }
  0xc4   :  { %v221_v51 = vpack.c.b16 %v217_v50, %v216_v49 }
  0xc6   :  { %381 = vmatmul.bf16.gmra.mxu2 %v221_v51 }
  0xd6   :  { %395 = vmatmul.bf16.vlgmr.msrb.gmra.mxu2 %v1257_v6  ;;  %v899_v6 = vld [vmem:[#allocation10 + $0x40] sm:$0xf] }
  0xd7   :  { %v900_v9 = vor.u32 %v998_v7, %v899_v6 }
  0xe6   :  { %400 = vmatmul.bf16.gmra.mxu2 %v1253_v4  ;;  %v909_v4 = vld [vmem:[#allocation10 + $0x58] sm:$0xf0] }
  0xe7   :  { %v912_v5 = vor.u32 %v999_v3, %v909_v4 }
  0xe9   :  { %555 = vmatpush.bf16.msrb.mxu0 %v912_v5 }
  0xed   :  { %556 = vmatpush.bf16.msrb.mxu0 %v904_v11 }
  0xf1   :  { %557 = vmatpush.bf16.msrb.mxu0 %v896_v17 }
  0xf5   :  { %558 = vmatpush.bf16.msrb.mxu0 %v888_v24 }
  0xf6   :  { %405 = vmatmul.bf16.gmra.mxu2 %v1249_v1  ;;  %v1000_v1 = vld [vmem:[#allocation10 + $0x54] sm:$0xf0] }
  0xf9   :  { %559 = vmatpush.bf16.msrb.mxu0 %v880_v30 }
  0xfd   :  { %560 = vmatpush.bf16.msrb.mxu0 %v872_v37 }
 0x106   :  { %410 = vmatmul.bf16.gmra.mxu2 %v1246_v0  ;;  %v908_v0 = vor.u32 %v1000_v1, %v907_v2 }
 0x108   :  { %526 = vmatpush.bf16.msrb.mxu3 %v908_v0 }
 0x10c   :  { %527 = vmatpush.bf16.msrb.mxu3 %v900_v9 }
 0x110   :  { %528 = vmatpush.bf16.msrb.mxu3 %v892_v15 }
 0x114   :  { %529 = vmatpush.bf16.msrb.mxu3 %v884_v22 }
 0x118   :  { %530 = vmatpush.bf16.msrb.mxu3 %v876_v28 }
 0x11c   :  { %531 = vmatpush.bf16.msrb.mxu3 %v868_v35  ;;  %v1007_v35 = vld [vmem:[#allocation4 + $0x10] sm:$0xff] }
 0x12d   :  { %v367_v39 = vpop.f32.mrf.mxu1 }
 0x12e   :  { %v368_v44 = vadd.f32 %v1057_v43, %v367_v39  ;;  %v1058_v39 = vld [vmem:[%s1291_s5] ss:$0 sm:$0xff]  ;;  %s1195_s5 = smov [#allocation12]  }
 0x12f   :  { %s746_s20 = sshll.u32 %s1195_s5, 4  ;;  %s747_s20 = int_to_ptr.vmem [resolvable:$true] %s746_s20 }
 0x135   :  { %v369_v41 = vpop.f32.mrf.mxu1 }
 0x136   :  { %v370_v45 = vadd.f32 %v1057_v43, %v369_v41 }
 0x139   :  { %v377_v18 = vpop.f32.mrf.mxu2 }
 0x13a   :  { %v378_v2 = vadd.f32 %v1057_v43, %v377_v18 }
 0x13d   :  { %v372_v49 = vpop.f32.mrf.mxu1 }
 0x13e   :  { %v373_v55 = vadd.f32 %v1057_v43, %v372_v49 }
 0x141   :  { %v379_v31 = vpop.f32.mrf.mxu2 }
 0x142   :  { %v380_v1 = vadd.f32 %v1057_v43, %v379_v31 }
 0x145   :  { %v374_v54 = vpop.f32.mrf.mxu1 }
 0x146   :  { %v375_v56 = vadd.f32 %v1057_v43, %v374_v54 }
 0x149   :  { %v382_v38 = vpop.f32.mrf.mxu2 }
 0x14a   :  { %v383_v9 = vadd.f32 %v1057_v43, %v382_v38 }
 0x151   :  { %v384_v40 = vpop.f32.mrf.mxu2 }
 0x152   :  { %v385_v10 = vadd.f32 %v1057_v43, %v384_v40 }
 0x159   :  { %v396_v42 = vpop.f32.mrf.mxu2 }
 0x15a   :  { %v397_v46 = vadd.f32 %v396_v42, %v368_v44 }
 0x15c   :  { %v416_v50 = vmax.f32 %v397_v46, 0.0 }
 0x161   :  { %v398_v47 = vpop.f32.mrf.mxu2 }
 0x162   :  { %v399_v48 = vadd.f32 %v398_v47, %v370_v45 }
 0x164   :  { %v417_v51 = vmax.f32 %v399_v48, 0.0 }
 0x166   :  { %v424_v52 = vpack.c.bf16 %v417_v51, %v416_v50 }
 0x168   :  { %532 = vmatmul.bf16.vlgmr.msrb.gmra.mxu3 %v424_v52  ;;  %561 = vmatmul.bf16.vlgmr.msrb.gmra.mxu0 %v424_v52 }
 0x169   :  { %v401_v53 = vpop.f32.mrf.mxu2 }
 0x16a   :  { %v402_v57 = vadd.f32 %v401_v53, %v373_v55 }
 0x16c   :  { %v418_v60 = vmax.f32 %v402_v57, 0.0 }
 0x171   :  { %v403_v58 = vpop.f32.mrf.mxu2 }
 0x172   :  { %v404_v59 = vadd.f32 %v403_v58, %v375_v56 }
 0x174   :  { %v419_v61 = vmax.f32 %v404_v59, 0.0 }
 0x176   :  { %v425_v62 = vpack.c.bf16 %v419_v61, %v418_v60 }
 0x178   :  { %537 = vmatmul.bf16.gmra.mxu3 %v425_v62  ;;  %566 = vmatmul.bf16.gmra.mxu0 %v425_v62 }
 0x179   :  { %v406_v63 = vpop.f32.mrf.mxu2 }
 0x17a   :  { %v407_v3 = vadd.f32 %v406_v63, %v378_v2 }
 0x17c   :  { %v420_v5 = vmax.f32 %v407_v3, 0.0 }
 0x181   :  { %v408_v0 = vpop.f32.mrf.mxu2 }
 0x182   :  { %v409_v4 = vadd.f32 %v408_v0, %v380_v1 }
 0x184   :  { %v421_v6 = vmax.f32 %v409_v4, 0.0 }
 0x186   :  { %v426_v7 = vpack.c.bf16 %v421_v6, %v420_v5 }
 0x188   :  { %542 = vmatmul.bf16.gmra.mxu3 %v426_v7  ;;  %571 = vmatmul.bf16.gmra.mxu0 %v426_v7 }
 0x189   :  { %v411_v8 = vpop.f32.mrf.mxu2 }
 0x18a   :  { %v412_v11 = vadd.f32 %v411_v8, %v383_v9 }
 0x18c   :  { %v422_v14 = vmax.f32 %v412_v11, 0.0 }
 0x191   :  { %v413_v12 = vpop.f32.mrf.mxu2 }
 0x192   :  { %v414_v13 = vadd.f32 %v413_v12, %v385_v10 }
 0x194   :  { %v423_v15 = vmax.f32 %v414_v13, 0.0 }
 0x196   :  { %v427_v16 = vpack.c.bf16 %v423_v15, %v422_v14 }
 0x198   :  { %547 = vmatmul.bf16.gmra.mxu3 %v427_v16  ;;  %576 = vmatmul.bf16.gmra.mxu0 %v427_v16 }
 0x1e5   :  { %v562_v37 = vpop.f32.mrf.mxu0 }
 0x1e6   :  { %v602_v40 = vadd.f32 %v1058_v39, %v562_v37 }
 0x1eb   :  { %v533_v17 = vpop.f32.mrf.mxu3 }
 0x1ed   :  { %v564_v38 = vpop.f32.mrf.mxu0 }
 0x1ee   :  { %v603_v44 = vadd.f32 %v1058_v39, %v564_v38 }
 0x1f3   :  { %v535_v18 = vpop.f32.mrf.mxu3 }
 0x1f4   :  { %v1016_v19 = vpack.c.bf16 %v535_v18, %v533_v17 }
 0x1f5   :  { %v567_v43 = vpop.f32.mrf.mxu0 }
 0x1f6   :  { %1017 = vst [vmem:[#allocation2 + $0x10] sm:$0xff] %v1016_v19   ;;  %v604_v48 = vadd.f32 %v1058_v39, %v567_v43 }
 0x1fb   :  { %v538_v20 = vpop.f32.mrf.mxu3 }
 0x1fd   :  { %v1009_v32 = vld [vmem:[#allocation2 + $0x10] sm:$0xff]  ;;  %v569_v47 = vpop.f32.mrf.mxu0 }
 0x1fe   :  { %v605_v52 = vadd.f32 %v1058_v39, %v569_v47 }
 0x203   :  { %v540_v21 = vpop.f32.mrf.mxu3 }
 0x204   :  { %v1021_v22 = vpack.c.bf16 %v540_v21, %v538_v20 }
 0x205   :  { %v572_v51 = vpop.f32.mrf.mxu0 }
 0x206   :  { %1033 = vst [vmem:[#allocation2] sm:$0xff] %v1021_v22   ;;  %v606_v55 = vadd.f32 %v1058_v39, %v572_v51 }
 0x20b   :  { %v543_v23 = vpop.f32.mrf.mxu3 }
 0x20d   :  { %v1010_v31 = vld [vmem:[#allocation2] sm:$0xff]  ;;  %v574_v56 = vpop.f32.mrf.mxu0 }
 0x20e   :  { %v607_v59 = vadd.f32 %v1058_v39, %v574_v56 }
 0x213   :  { %v545_v24 = vpop.f32.mrf.mxu3 }
 0x214   :  { %v1026_v25 = vpack.c.bf16 %v545_v24, %v543_v23 }
 0x215   :  { %v577_v62 = vpop.f32.mrf.mxu0 }
 0x216   :  { %1034 = vst [vmem:[#allocation2 + $0x18] sm:$0xff] %v1026_v25   ;;  %v608_v63 = vadd.f32 %v1058_v39, %v577_v62 }
 0x21b   :  { %v548_v26 = vpop.f32.mrf.mxu3 }
 0x21d   :  { %v1011_v30 = vld [vmem:[#allocation2 + $0x18] sm:$0xff]  ;;  %v579_v3 = vpop.f32.mrf.mxu0 }
 0x21e   :  { %v609_v0 = vadd.f32 %v1058_v39, %v579_v3 }
 0x223   :  { %v550_v27 = vpop.f32.mrf.mxu3 }
 0x224   :  { %v1031_v28 = vpack.c.bf16 %v550_v27, %v548_v26 }
 0x226   :  { %1035 = vst [vmem:[#allocation2 + $0x8] sm:$0xff] %v1031_v28  }
 0x22d   :  { %v1012_v29 = vld [vmem:[#allocation2 + $0x8] sm:$0xff] }
 0x22e   :  { %709 = vmatpush.bf16.msrb.mxu1 %v1012_v29 }
 0x232   :  { %710 = vmatpush.bf16.msrb.mxu1 %v1011_v30 }
 0x236   :  { %711 = vmatpush.bf16.msrb.mxu1 %v1010_v31 }
 0x23a   :  { %712 = vmatpush.bf16.msrb.mxu1 %v1009_v32 }
 0x23d   :  { %961 = vmatmul.msk.bf16.vlgmr.msrb.gmra.mxu1 %vm152_vm0, %v1005_v33 }
 0x24d   :  { %962 = vmatmul.msk.bf16.gmra.mxu1 %vm152_vm0, %v1006_v34 }
 0x25d   :  { %963 = vmatmul.msk.bf16.gmra.mxu1 %vm152_vm0, %v1007_v35 }
 0x26d   :  { %964 = vmatmul.msk.bf16.gmra.mxu1 %vm152_vm0, %v1008_v36 }
 0x2ba   :  { %v714_v41 = vpop.f32.mrf.mxu1 }
 0x2bb   :  { %v715_v42 = vadd.f32 %v714_v41, %v602_v40 }
 0x2bd   :  { %734 = vst [vmem:[#allocation12] sm:$0xff] %v715_v42 }
 0x2c2   :  { %v716_v45 = vpop.f32.mrf.mxu1 }
 0x2c3   :  { %v717_v46 = vadd.f32 %v716_v45, %v603_v44 }
 0x2c5   :  { %735 = vst [vmem:[#allocation12 + $0x8] sm:$0xff] %v717_v46 }
 0x2ca   :  { %v719_v49 = vpop.f32.mrf.mxu1 }
 0x2cb   :  { %v720_v50 = vadd.f32 %v719_v49, %v604_v48 }
 0x2cd   :  { %736 = vst [vmem:[#allocation12 + $0x10] sm:$0xff] %v720_v50 }
 0x2d2   :  { %v721_v53 = vpop.f32.mrf.mxu1 }
 0x2d3   :  { %v722_v54 = vadd.f32 %v721_v53, %v605_v52 }
 0x2d5   :  { %737 = vst [vmem:[#allocation12 + $0x18] sm:$0xff] %v722_v54 }
 0x2da   :  { %v724_v57 = vpop.f32.mrf.mxu1 }
 0x2db   :  { %v725_v58 = vadd.f32 %v724_v57, %v606_v55 }
 0x2dd   :  { %738 = vst [vmem:[#allocation12 + $0x20] sm:$0xff] %v725_v58 }
 0x2e2   :  { %v726_v60 = vpop.f32.mrf.mxu1 }
 0x2e3   :  { %v727_v61 = vadd.f32 %v726_v60, %v607_v59 }
 0x2e5   :  { %739 = vst [vmem:[#allocation12 + $0x28] sm:$0xff] %v727_v61 }
 0x2ea   :  { %v729_v2 = vpop.f32.mrf.mxu1 }
 0x2eb   :  { %v730_v1 = vadd.f32 %v729_v2, %v608_v63 }
 0x2ed   :  { %740 = vst [vmem:[#allocation12 + $0x30] sm:$0xff] %v730_v1 }
 0x2f2   :  { %v731_v4 = vpop.f32.mrf.mxu1 }
 0x2f3   :  { %v732_v5 = vadd.f32 %v731_v4, %v609_v0 }
 0x2f5   :  { %741 = vst [vmem:[#allocation12 + $0x38] sm:$0xff] %v732_v5 }
 0x2f6   :  { %754 = dma.vmem_to_hbm [thread:$0]  %s747_s20, 1024, %s749_s23, [#allocation6], %s1193_s17, %s1193_s17, %s1194_s18  }
 0x2f7   :  { %1185 = dma.done.wait [#allocation6], 1024  }
 0x2f8   :  { %1186 = vsyncadd [#allocation6], 4294966272 }
 0x2f9   :  { %759 = vsyncpa [#allocation5], 1 }
 0x2fa   :  { %760 = vsyncpa [#allocation8], 1 }
 0x2fb   :  { %761 = vsyncpa [#allocation11], 1 }
 0x2fc   :  { %762 = vsyncpa [#allocation6], 1 }

</bundles_post_ra>
